<compile_context>
chip_gen: v7x
topology: tpu7x:2x2x1
jax: 0.10.0
libtpu: 0.0.40
codegen_flags: <defaults>
</compile_context>

<pallas_src>
import functools

import jax
import jax.numpy as jnp
from jax.experimental import pallas as pl
from jax.experimental.pallas import tpu as pltpu


def init_layer_kernel(noise_ref, w_ref, avg_ref, pool_ref, gamma_ref, beta_ref,
                      out_ref, *, half, eps):
    # ConvTranspose2d on a 1x1 input == a single MXU matmul, lane-dense result:
    #   (B_pad, nz) @ (nz, 2C*16) -> (B_pad, 2C*16)
    y = jnp.dot(noise_ref[...], w_ref[...], preferred_element_type=jnp.float32)

    # BatchNorm2d training-mode statistics, entirely on the MXU:
    #   avg_ref  : (1, B_pad)  with 1/B on real rows, 0 on pad rows
    #   pool_ref : (2C*16, 2C*16) block matrix (1/16 within each channel's
    #              16-lane block) -> averages over HxW and broadcasts back.
    mean_lane = jnp.dot(avg_ref[...], y, preferred_element_type=jnp.float32)
    msq_lane = jnp.dot(avg_ref[...], y * y, preferred_element_type=jnp.float32)
    mean_b = jnp.dot(mean_lane, pool_ref[...], preferred_element_type=jnp.float32)
    ex2_b = jnp.dot(msq_lane, pool_ref[...], preferred_element_type=jnp.float32)
    var_b = ex2_b - mean_b * mean_b  # biased variance (matches torch BN training)

    yn = (y - mean_b) * jax.lax.rsqrt(var_b + eps) * gamma_ref[...] + beta_ref[...]

    # GLU over channels: each channel is a contiguous 16-lane block, so the two
    # halves are plain lane slices of the 128-lane row.
    out_ref[...] = yn[:, :half] * jax.nn.sigmoid(yn[:, half:])


@functools.partial(jax.jit, static_argnames=("C", "eps"))
def init_layer(noise2d, w_flat, gamma, beta, C, eps=1e-5):
    """noise2d: (B, nz) f32; w_flat: (nz, 2C*16) spectrally-normalized convT weight."""
    B, nz = noise2d.shape
    HW = 16                      # 4 * 4 output spatial positions
    two_c = 2 * C
    width = two_c * HW           # 2C*16 lanes (128 for C=4)
    half = C * HW

    # Pad batch to the 8-sublane granularity so dot / stores are unmasked.
    B_pad = max(8, ((B + 7) // 8) * 8)
    noise_p = jnp.zeros((B_pad, nz), jnp.float32).at[:B].set(noise2d)

    # (1, B_pad) batch-averaging row: zero weight on pad rows keeps BN exact.
    avg_row = jnp.zeros((1, B_pad), jnp.float32).at[0, :B].set(1.0 / B)

    # (width, width) pooling matrix: averages each channel's 16 spatial lanes
    # and broadcasts the result back across the block (lane-dense, MXU-friendly).
    lane = jnp.arange(width)
    pool = (lane[:, None] // HW == lane[None, :] // HW).astype(jnp.float32) / HW

    # Pre-broadcast BN affine params to lane-dense (1, width).
    gamma_b = jnp.repeat(gamma.reshape(1, two_c), HW, axis=1)
    beta_b = jnp.repeat(beta.reshape(1, two_c), HW, axis=1)

    out = pl.pallas_call(
        functools.partial(init_layer_kernel, half=half, eps=eps),
        out_shape=jax.ShapeDtypeStruct((B_pad, half), jnp.float32),
        in_specs=[pl.BlockSpec(memory_space=pltpu.MemorySpace.VMEM)] * 6,
        out_specs=pl.BlockSpec(memory_space=pltpu.MemorySpace.VMEM),
    )(noise_p, w_flat, avg_row, pool, gamma_b, beta_b)

    # Drop batch padding and restore NCHW: channel c lives in lanes [16c, 16c+16),
    # row-major over (h, w).
    return out[:B].reshape(B, C, 4, 4)


def spectral_normalize_convT(w, u, n_power_iterations=1, eps=1e-12):
    """Mirror torch.nn.utils.spectral_norm for a ConvTranspose2d weight.

    PyTorch uses dim=1 for ConvTranspose modules, i.e. the power iteration runs
    on weight.permute(1, 0, 2, 3).reshape(out_channels, -1) = (2C, nz*kH*kW).
    """
    out_c = w.shape[1]
    w_mat = jnp.transpose(w, (1, 0, 2, 3)).reshape(out_c, -1)
    v = None
    for _ in range(n_power_iterations):
        v = w_mat.T @ u
        v = v / jnp.maximum(jnp.linalg.norm(v), eps)
        u = w_mat @ v
        u = u / jnp.maximum(jnp.linalg.norm(u), eps)
    sigma = u @ (w_mat @ v)
    return w / sigma


if __name__ == "__main__":
    B, nz, channel = 2, 32, 4  # small shapes consistent with the module

    key = jax.random.PRNGKey(0)
    k_noise, k_w, k_u = jax.random.split(key, 3)

    # Input noise; noise.view(B, -1, 1, 1) is captured by treating it as (B, nz).
    noise = jax.random.normal(k_noise, (B, nz), dtype=jnp.float32)

    # ConvTranspose2d weight: (in_channels=nz, out_channels=2*channel, 4, 4).
    w = 0.1 * jax.random.normal(k_w, (nz, 2 * channel, 4, 4), dtype=jnp.float32)

    # Spectral norm power-iteration vector (shape = out_channels, like torch).
    u0 = jax.random.normal(k_u, (2 * channel,), dtype=jnp.float32)
    u0 = u0 / jnp.linalg.norm(u0)
    w_sn = spectral_normalize_convT(w, u0)

    # Flatten to (nz, 2C*16): channel c occupies 16 contiguous columns (h*4+w).
    w_flat = w_sn.reshape(nz, 2 * channel * 16)

    # BatchNorm2d affine params at init: gamma=1, beta=0.
    gamma = jnp.ones((2 * channel,), dtype=jnp.float32)
    beta = jnp.zeros((2 * channel,), dtype=jnp.float32)

    out = init_layer(noise, w_flat, gamma, beta, channel)
    jax.block_until_ready(out)
    assert out.shape == (B, channel, 4, 4)

    # Plain-JAX reference of the same forward for a sanity check.
    y_ref = (noise @ w_flat).reshape(B, 2 * channel, 16)
    mean = y_ref.mean(axis=(0, 2), keepdims=True)
    var = ((y_ref - mean) ** 2).mean(axis=(0, 2), keepdims=True)
    yn_ref = (y_ref - mean) * jax.lax.rsqrt(var + 1e-5)
    yn_ref = yn_ref * gamma.reshape(1, -1, 1) + beta.reshape(1, -1, 1)
    ref = (yn_ref[:, :channel] * jax.nn.sigmoid(yn_ref[:, channel:])).reshape(
        B, channel, 4, 4)
    assert jnp.max(jnp.abs(out - ref)) < 1e-4

    print("KERNEL_OK")
</pallas_src>

<mosaic_0001>
module attributes {stable_mosaic.version = 11 : i64} {
  func.func @init_layer_kernel(%arg0: memref<8x32xf32, #tpu.memory_space<vmem>>, %arg1: memref<32x128xf32, #tpu.memory_space<vmem>>, %arg2: memref<1x8xf32, #tpu.memory_space<vmem>>, %arg3: memref<128x128xf32, #tpu.memory_space<vmem>>, %arg4: memref<1x128xf32, #tpu.memory_space<vmem>>, %arg5: memref<1x128xf32, #tpu.memory_space<vmem>>, %arg6: memref<8x64xf32, #tpu.memory_space<vmem>>) attributes {dimension_semantics = [], scalar_prefetch = 0 : i64, scratch_operands = 0 : i64, tpu.core_type = #tpu.core_type<tc>} {
    %c0 = arith.constant 0 : index
    %c0_0 = arith.constant 0 : index
    %0 = vector.load %arg0[%c0, %c0_0] : memref<8x32xf32, #tpu.memory_space<vmem>>, vector<8x32xf32>
    %c0_1 = arith.constant 0 : index
    %c0_2 = arith.constant 0 : index
    %1 = vector.load %arg1[%c0_1, %c0_2] : memref<32x128xf32, #tpu.memory_space<vmem>>, vector<32x128xf32>
    %cst = arith.constant dense<0.000000e+00> : vector<8x128xf32>
    %2 = tpu.matmul %0, %1, %cst {dimension_numbers = #tpu.dot_dimension_numbers<[1], [0], [0], [1], [0, 0, 1, 1], [], []>} : vector<8x32xf32>, vector<32x128xf32>, vector<8x128xf32> -> vector<8x128xf32>
    %c0_3 = arith.constant 0 : index
    %c0_4 = arith.constant 0 : index
    %3 = vector.load %arg2[%c0_3, %c0_4] : memref<1x8xf32, #tpu.memory_space<vmem>>, vector<1x8xf32>
    %cst_5 = arith.constant dense<0.000000e+00> : vector<1x128xf32>
    %4 = tpu.matmul %3, %2, %cst_5 {dimension_numbers = #tpu.dot_dimension_numbers<[1], [0], [0], [1], [0, 0, 1, 1], [], []>} : vector<1x8xf32>, vector<8x128xf32>, vector<1x128xf32> -> vector<1x128xf32>
    %c0_6 = arith.constant 0 : index
    %c0_7 = arith.constant 0 : index
    %5 = vector.load %arg2[%c0_6, %c0_7] : memref<1x8xf32, #tpu.memory_space<vmem>>, vector<1x8xf32>
    %6 = arith.mulf %2, %2 : vector<8x128xf32>
    %cst_8 = arith.constant dense<0.000000e+00> : vector<1x128xf32>
    %7 = tpu.matmul %5, %6, %cst_8 {dimension_numbers = #tpu.dot_dimension_numbers<[1], [0], [0], [1], [0, 0, 1, 1], [], []>} : vector<1x8xf32>, vector<8x128xf32>, vector<1x128xf32> -> vector<1x128xf32>
    %c0_9 = arith.constant 0 : index
    %c0_10 = arith.constant 0 : index
    %8 = vector.load %arg3[%c0_9, %c0_10] : memref<128x128xf32, #tpu.memory_space<vmem>>, vector<128x128xf32>
    %cst_11 = arith.constant dense<0.000000e+00> : vector<1x128xf32>
    %9 = tpu.matmul %4, %8, %cst_11 {dimension_numbers = #tpu.dot_dimension_numbers<[1], [0], [0], [1], [0, 0, 1, 1], [], []>} : vector<1x128xf32>, vector<128x128xf32>, vector<1x128xf32> -> vector<1x128xf32>
    %c0_12 = arith.constant 0 : index
    %c0_13 = arith.constant 0 : index
    %10 = vector.load %arg3[%c0_12, %c0_13] : memref<128x128xf32, #tpu.memory_space<vmem>>, vector<128x128xf32>
    %cst_14 = arith.constant dense<0.000000e+00> : vector<1x128xf32>
    %11 = tpu.matmul %7, %10, %cst_14 {dimension_numbers = #tpu.dot_dimension_numbers<[1], [0], [0], [1], [0, 0, 1, 1], [], []>} : vector<1x128xf32>, vector<128x128xf32>, vector<1x128xf32> -> vector<1x128xf32>
    %12 = arith.mulf %9, %9 : vector<1x128xf32>
    %13 = arith.subf %11, %12 : vector<1x128xf32>
    %14 = vector.broadcast %9 : vector<1x128xf32> to vector<8x128xf32>
    %15 = arith.subf %2, %14 : vector<8x128xf32>
    %cst_15 = arith.constant 9.99999974E-6 : f32
    %16 = vector.broadcast %cst_15 : f32 to vector<1x128xf32>
    %17 = arith.addf %13, %16 : vector<1x128xf32>
    %18 = math.rsqrt %17 : vector<1x128xf32>
    %19 = vector.broadcast %18 : vector<1x128xf32> to vector<8x128xf32>
    %20 = arith.mulf %15, %19 : vector<8x128xf32>
    %c0_16 = arith.constant 0 : index
    %c0_17 = arith.constant 0 : index
    %21 = vector.load %arg4[%c0_16, %c0_17] : memref<1x128xf32, #tpu.memory_space<vmem>>, vector<1x128xf32>
    %22 = vector.broadcast %21 : vector<1x128xf32> to vector<8x128xf32>
    %23 = arith.mulf %20, %22 : vector<8x128xf32>
    %c0_18 = arith.constant 0 : index
    %c0_19 = arith.constant 0 : index
    %24 = vector.load %arg5[%c0_18, %c0_19] : memref<1x128xf32, #tpu.memory_space<vmem>>, vector<1x128xf32>
    %25 = vector.broadcast %24 : vector<1x128xf32> to vector<8x128xf32>
    %26 = arith.addf %23, %25 : vector<8x128xf32>
    %27 = vector.extract_strided_slice %26 {offsets = [0, 0], sizes = [8, 64], strides = [1, 1]} : vector<8x128xf32> to vector<8x64xf32>
    %28 = vector.extract_strided_slice %26 {offsets = [0, 64], sizes = [8, 64], strides = [1, 1]} : vector<8x128xf32> to vector<8x64xf32>
    %29 = arith.negf %28 : vector<8x64xf32>
    %30 = math.exp %29 : vector<8x64xf32>
    %cst_20 = arith.constant 1.000000e+00 : f32
    %31 = vector.broadcast %cst_20 : f32 to vector<8x64xf32>
    %32 = arith.addf %31, %30 : vector<8x64xf32>
    %33 = arith.divf %31, %32 : vector<8x64xf32>
    %34 = arith.mulf %27, %33 : vector<8x64xf32>
    %c0_21 = arith.constant 0 : index
    %c0_22 = arith.constant 0 : index
    %35 = vector.load %arg6[%c0_21, %c0_22] : memref<8x64xf32, #tpu.memory_space<vmem>>, vector<8x64xf32>
    tpu.vector_store %arg6[%c0_21, %c0_22], %34 {strides = array<i32>} : memref<8x64xf32, #tpu.memory_space<vmem>>, vector<8x64xf32>,
    return
  }
}

</mosaic_0001>

<bundles_post_ra>
// kernel: init_layer.1
= control target key start
LH: loop header
LB: loop body
LE: loop exit
PB: predicated region body
PF: predicated region fallthrough
CT: control target
= control target key end

     0   :  { %v655_v0 = vmov 0.0|0.0   ;;  %vm656_vm0 = vmmov 0   ;;  %v657_v4 = vmov 0.0   ;;  %vm28_vm1 = vcmask 261120   ;;  %s658_s15 = smov 64   ;;  %s799_s1 = inlined_call_operand.vmem [shape: f32[32,128], index: 1, kind: input, shape index: {}]   ;;  %s800_s0 = inlined_call_operand.vmem [shape: f32[8,32], index: 0, kind: input, shape index: {}]   ;;  %s801_s3 = inlined_call_operand.vmem [shape: f32[128,128], index: 3, kind: input, shape index: {}]   ;;  %s802_s2 = inlined_call_operand.vmem [shape: f32[1,8], index: 2, kind: input, shape index: {}]   ;;  %s803_s4 = inlined_call_operand.vmem [shape: f32[1,128], index: 4, kind: input, shape index: {}]   ;;  %s804_s5 = inlined_call_operand.vmem [shape: f32[1,128], index: 5, kind: input, shape index: {}]   ;;  %s805_s6 = inlined_call_operand.vmem [shape: f32[8,64], index: 6, kind: output, shape index: {}]  }
   0x1   :  { %591 = vmatprep.subr.bf16.mxu0 %v655_v0  ;;  %v24_v1 = vld [vmem:[%s799_s1] sm:$0xff]  ;;  %v25_v2 = vld [vmem:[%s799_s1 + $0x8] sm:$0xff]  ;;  %v26_v3 = vld [vmem:[%s799_s1 + $0x10] sm:$0xff]  ;;  %508 = vmatprep.mubr.msk.f32.mxu0 %vm656_vm0, %v657_v4  ;;  %vm103_vm2 = vcmask 64512   ;;  %v406_v41 = vlaneseq  ;;  %vm445_vm3 = vcmask 523264  }
   0x2   :  { %v592_v5 = vpack.c.bf16 %v25_v2, %v24_v1  ;;  %v27_v6 = vld [vmem:[%s799_s1 + $0x18] sm:$0xff]  ;;  %511 = vmatprep.subr.mxu1 %v657_v4  ;;  %513 = vmatprep.mubr.msk.f32.mxu1 %vm656_vm0, %v657_v4  ;;  %v23_v8 = vld [vmem:[%s800_s0] sm:$0xff]  ;;  %v249_v10 = vld [vmem:[%s801_s3 + $0x8] sm:$0xff] }
   0x3   :  { %v595_v7 = vpack.c.bf16 %v27_v6, %v26_v3  ;;  %v248_v9 = vld [vmem:[%s801_s3] sm:$0xff]  ;;  %v250_v12 = vld [vmem:[%s801_s3 + $0x10] sm:$0xff]  ;;  %v251_v13 = vld [vmem:[%s801_s3 + $0x18] sm:$0xff]  ;;  %v407_v42 = vshrl.u32 %v406_v41, 7 }
   0x4   :  { %593 = vmatpush3.bf16.msra.mxu0 %v592_v5  ;;  %v598_v11 = vpack.c.bf16 %v249_v10, %v248_v9  ;;  %v601_v14 = vpack.c.bf16 %v251_v13, %v250_v12  ;;  %v252_v15 = vld [vmem:[%s801_s3 + $0x20] sm:$0xff]  ;;  %v253_v16 = vld [vmem:[%s801_s3 + $0x28] sm:$0xff]  ;;  %v254_v18 = vld [vmem:[%s801_s3 + $0x30] sm:$0xff] }
   0x5   :  { %594 = vmatprep.subr.bf16.mxu0 %v655_v0  ;;  %v604_v17 = vpack.c.bf16 %v253_v16, %v252_v15  ;;  %v255_v19 = vld [vmem:[%s801_s3 + $0x38] sm:$0xff]  ;;  %v256_v21 = vld [vmem:[%s801_s3 + $0x40] sm:$0xff]  ;;  %v257_v22 = vld [vmem:[%s801_s3 + $0x48] sm:$0xff]  ;;  %v408_v43 = vsub.s32 0, %v407_v42 }
   0x6   :  { %v607_v20 = vpack.c.bf16 %v255_v19, %v254_v18  ;;  %v610_v23 = vpack.c.bf16 %v257_v22, %v256_v21  ;;  %v258_v24 = vld [vmem:[%s801_s3 + $0x50] sm:$0xff]  ;;  %v259_v25 = vld [vmem:[%s801_s3 + $0x58] sm:$0xff]  ;;  %v260_v27 = vld [vmem:[%s801_s3 + $0x60] sm:$0xff] }
   0x7   :  { %v613_v26 = vpack.c.bf16 %v259_v25, %v258_v24  ;;  %v261_v28 = vld [vmem:[%s801_s3 + $0x68] sm:$0xff]  ;;  %v262_v30 = vld [vmem:[%s801_s3 + $0x70] sm:$0xff]  ;;  %v263_v31 = vld [vmem:[%s801_s3 + $0x78] sm:$0xff] }
   0x8   :  { %596 = vmatpush3.bf16.msra.mxu0 %v595_v7  ;;  %v616_v29 = vpack.c.bf16 %v261_v28, %v260_v27  ;;  %v619_v32 = vpack.c.bf16 %v263_v31, %v262_v30  ;;  %v102_v33 = vld [vmem:[%s802_s2] sm:$0x1] }
   0x9   :  { %621 = vmatprep.subr.bf16.mxu0 %v655_v0  ;;  %v454_v55 = vld [vmem:[%s803_s4] ss:$0 sm:$0xff] }
   0xa   :  { %v455_v57 = vld [vmem:[%s804_s5] ss:$0 sm:$0xff] }
   0xb   :  { %509 = vmatmul.mubr.msk.f32.vlgmr.msra.gmra.mrb[0].mxu0 %vm28_vm1, %v23_v8 }
   0xc   :  { %588 = vmatprep.mubr.msk.f32.mxu0 %vm656_vm0, %v657_v4  ;;  %623 = vmatpush3.bf16.msra.mxu0 %v598_v11 }
   0xd   :  { %624 = vmatprep.subr.bf16.mxu0 %v655_v0 }
  0x10   :  { %626 = vmatpush3.bf16.msra.mxu0 %v601_v14 }
  0x11   :  { %627 = vmatprep.subr.bf16.mxu0 %v655_v0 }
  0x14   :  { %629 = vmatpush3.bf16.msra.mxu0 %v604_v17 }
  0x15   :  { %630 = vmatprep.subr.bf16.mxu0 %v655_v0 }
  0x18   :  { %632 = vmatpush3.bf16.msra.mxu0 %v607_v20 }
  0x19   :  { %633 = vmatprep.subr.bf16.mxu0 %v655_v0 }
  0x1c   :  { %635 = vmatpush3.bf16.msra.mxu0 %v610_v23 }
  0x1d   :  { %636 = vmatprep.subr.bf16.mxu0 %v655_v0 }
  0x20   :  { %638 = vmatpush3.bf16.msra.mxu0 %v613_v26 }
  0x21   :  { %639 = vmatprep.subr.bf16.mxu0 %v655_v0 }
  0x24   :  { %641 = vmatpush3.bf16.msra.mxu0 %v616_v29 }
  0x25   :  { %642 = vmatprep.subr.bf16.mxu0 %v655_v0 }
  0x28   :  { %644 = vmatpush3.bf16.msra.mxu0 %v619_v32 }
  0xde   :  { %v98_v34 = vpop.f32.mrb[0].mxu0 }
  0xdf   :  { %v177_v35 = vmul.f32 %v98_v34, %v98_v34  ;;  %v510_v36 = vpop.f32.mrb[1].mxu0  ;;  %512 = vmatpush3.msra.mxu1 %v98_v34 }
  0xe0   :  { %514 = vmatmul.mubr.msk.f32.vlgmr.msra.gmra.mrb[0].mxu1 %vm103_vm2, %v102_v33  ;;  %516 = vmatprep.subr.mxu1 %v657_v4 }
  0xe1   :  { %517 = vmatpush3.msra.mxu1 %v177_v35  ;;  %518 = vmatprep.mubr.msk.f32.mxu1 %vm656_vm0, %v657_v4 }
  0xe2   :  { %597 = vmatprep.subr.bf16.mxu1 %v655_v0 }
  0xe4   :  { %519 = vmatmul.mubr.msk.f32.vlgmr.msra.gmra.mrb[2].mxu1 %vm103_vm2, %v102_v33 }
  0xe5   :  { %599 = vmatpush3.bf16.msra.mxu1 %v598_v11  ;;  %553 = vmatprep.mubr.msk.f32.mxu1 %vm656_vm0, %v657_v4 }
  0xe6   :  { %600 = vmatprep.subr.bf16.mxu1 %v655_v0 }
  0xe9   :  { %602 = vmatpush3.bf16.msra.mxu1 %v601_v14 }
  0xea   :  { %603 = vmatprep.subr.bf16.mxu1 %v655_v0 }
  0xed   :  { %605 = vmatpush3.bf16.msra.mxu1 %v604_v17 }
  0xee   :  { %606 = vmatprep.subr.bf16.mxu1 %v655_v0 }
  0xf1   :  { %608 = vmatpush3.bf16.msra.mxu1 %v607_v20 }
  0xf2   :  { %609 = vmatprep.subr.bf16.mxu1 %v655_v0 }
  0xf5   :  { %611 = vmatpush3.bf16.msra.mxu1 %v610_v23 }
  0xf6   :  { %612 = vmatprep.subr.bf16.mxu1 %v655_v0 }
  0xf9   :  { %614 = vmatpush3.bf16.msra.mxu1 %v613_v26 }
  0xfa   :  { %615 = vmatprep.subr.bf16.mxu1 %v655_v0 }
  0xfd   :  { %617 = vmatpush3.bf16.msra.mxu1 %v616_v29 }
  0xfe   :  { %618 = vmatprep.subr.bf16.mxu1 %v655_v0 }
 0x101   :  { %620 = vmatpush3.bf16.msra.mxu1 %v619_v32 }
 0x1b3   :  { %v173_v37 = vpop.f32.mrb[0].mxu1 }
 0x1b4   :  { %v515_v38 = vpop.f32.mrb[1].mxu1  ;;  %554 = vmatmul.mubr.f32.vlgmr.msra.gmra.mrb[4].mxu1 %v173_v37 }
 0x1b7   :  { %v244_v39 = vpop.f32.mrb[2].mxu1 }
 0x1b8   :  { %v520_v40 = vpop.f32.mrb[3].mxu1  ;;  %589 = vmatmul.mubr.f32.vlgmr.msra.gmra.mrb[2].mxu0 %v244_v39 }
 0x287   :  { %v330_v44 = vpop.f32.mrb[4].mxu1 }
 0x288   :  { %v409_v45 = vrot.slane %v330_v44, %v408_v43  ;;  %v555_v46 = vpop.f32.mrb[5].mxu1  ;;  %v404_v47 = vmul.f32 %v330_v44, %v330_v44 }
 0x28a   :  { %v410_v48 = vsub.f32 %v98_v34, %v409_v45 }
 0x28b   :  { %v400_v49 = vpop.f32.mrb[2].mxu0 }
 0x28c   :  { %v405_v50 = vsub.f32 %v400_v49, %v404_v47  ;;  %v590_v51 = vpop.f32.mrb[3].mxu0 }
 0x28e   :  { %v411_v52 = vadd.f32 1e-05, %v405_v50 }
 0x290   :  { %649 = vrsqrt.f32 %v411_v52 }
 0x29a   :  { %v650_v53 = vpop.eup %649 }
 0x29b   :  { %v416_v54 = vrot.slane %v650_v53, %v408_v43 }
 0x29d   :  { %v417_v56 = vmul.f32 %v416_v54, %v410_v48 }
 0x29f   :  { %v425_v58 = vmul.f32 %v454_v55, %v417_v56 }
 0x2a1   :  { %v433_v59 = vadd.f32 %v455_v57, %v425_v58 }
 0x2a3   :  { %v456_v60 = vmul.f32 -1.442695, %v433_v59 }
 0x2a5   :  { %651 = vpow2.f32 %v456_v60 }
 0x2af   :  { %v652_v61 = vpop.eup %651 }
 0x2b0   :  { %v437_v62 = vadd.f32 1.0, %v652_v61 }
 0x2b2   :  { %653 = vrcp.f32 %v437_v62 }
 0x2bc   :  { %v654_v63 = vpop.eup %653 }
 0x2bd   :  { %441 = vrot.lane.b32.xlu0 %v654_v63, %s658_s15 }
 0x32f   :  { %v442_v0 = vpop.permute.xlu0 %441 }
 0x330   :  { %v444_v1 = vmul.f32 %v442_v0, %v433_v59 }
 0x332   :  { %446 = vst.msk [vmem:[%s805_s6] sm:$0xff] %vm445_vm3, %v444_v1 }

</bundles_post_ra>
